<compile_context>
chip_gen: v7x
topology: tpu7x:2x2x1
jax: 0.10.0
libtpu: 0.0.40
codegen_flags: <defaults>
</compile_context>

<pallas_src>
import functools

import jax
import jax.numpy as jnp
from jax.experimental import pallas as pl
from jax.experimental.pallas import tpu as pltpu


def _sru_kernel(x_ref, p_ref, gw_ref, bw_ref, o_ref, *,
                gate_threshold: float, eps: float, half: int):
    # x_ref/o_ref: (NB, C, HWp); p_ref: (C, C); gw_ref/bw_ref: (C, 1)
    nb = x_ref.shape[0]
    x_in = x_ref[...]                                     # (NB, C, HWp)
    xf = x_in.astype(jnp.float32)

    # --- one-pass GroupNorm statistics (f32 accumulation) ---
    s1 = jnp.sum(xf, axis=-1, keepdims=True)              # (NB, C, 1) sum(x)
    s2 = jnp.sum(xf * xf, axis=-1, keepdims=True)         # (NB, C, 1) sum(x^2)
    stats = jnp.concatenate([s1, s2], axis=-1)            # (NB, C, 2)

    p = p_ref[...]                                        # (C, C) group-average matrix
    gw = gw_ref[...]                                      # (C, 1) gamma * w_gamma
    bw = bw_ref[...]                                      # (C, 1) beta  * w_gamma
    scales, biases = [], []
    for b in range(nb):                                   # NB is small & static
        gm = jnp.dot(p, stats[b], preferred_element_type=jnp.float32)  # (C, 2)
        mean = gm[:, 0:1]
        ex2 = gm[:, 1:2]
        var = jnp.maximum(ex2 - mean * mean, jnp.float32(0.0))
        inv = jax.lax.rsqrt(var + jnp.float32(eps))
        sc = inv * gw                                     # (C, 1) folded scale
        scales.append(sc)
        biases.append(bw - mean * sc)                     # (C, 1) folded bias
    scale = jnp.stack(scales, axis=0)                     # (NB, C, 1)
    bias = jnp.stack(biases, axis=0)                      # (NB, C, 1)

    # --- gating + reconstruct, in bf16 when the input is bf16 (v6e/v7x) ---
    if x_in.dtype == jnp.bfloat16:
        xc = x_in
        cdt = jnp.bfloat16
    else:
        xc = xf
        cdt = jnp.float32
    rew = jax.nn.sigmoid(xc * scale.astype(cdt) + bias.astype(cdt))   # (NB, C, HWp)
    rx = rew * xc
    t = jnp.array(gate_threshold, dtype=cdt)
    zero = jnp.zeros((), dtype=cdt)

    rew_t, rew_b = rew[:, :half], rew[:, half:]
    rx_t, rx_b = rx[:, :half], rx[:, half:]
    x_t, x_b = xc[:, :half], xc[:, half:]

    # out_top = x1[:half] + x2[half:] ; out_bot = x1[half:] + x2[:half]
    o_ref[:, :half, :] = (jnp.where(rew_t > t, x_t, rx_t)
                          + jnp.where(rew_b > t, zero, rx_b)).astype(o_ref.dtype)
    o_ref[:, half:, :] = (jnp.where(rew_b > t, x_b, rx_b)
                          + jnp.where(rew_t > t, zero, rx_t)).astype(o_ref.dtype)


def _choose_nb(N, sample_in_bytes, sample_work_bytes,
               budget=40 << 20, max_nb=16):
    """Largest batch-per-step that fits the VMEM budget; keeps >=2 grid steps
    (both v7x TensorCores busy) once blocks are already >= 1 MiB."""
    best = 1
    for d in range(1, min(N, max_nb) + 1):
        if N % d:
            continue
        step_bytes = 4 * d * sample_in_bytes + d * sample_work_bytes
        if step_bytes > budget:
            break
        if d > 1 and N // d < 2 and best * sample_in_bytes >= (1 << 20):
            break
        best = d
    return best


@functools.partial(jax.jit,
                   static_argnames=("group_num", "gate_threshold", "eps"))
def sru_forward(x, gamma, beta, *, group_num=16, gate_threshold=0.5, eps=1e-5):
    """SRU forward.  x: (N, C, H, W); gamma/beta: (C,) GroupNorm affine params."""
    N, C, H, W = x.shape
    assert C % group_num == 0 and C % 2 == 0
    HW = H * W
    x3 = x.reshape(N, C, HW)

    # Pad the lane axis to a multiple of 128: zero lanes don't change sum(x) or
    # sum(x^2), and the padded tail is sliced off after the kernel.  This keeps
    # every load/store lane-dense and unmasked.
    pad = (-HW) % 128
    if pad:
        x3 = jnp.pad(x3, ((0, 0), (0, 0), (0, pad)))
    HWp = HW + pad

    # Folded per-channel params: w_gamma = gamma / sum(gamma).
    gamma_f32 = gamma.astype(jnp.float32)
    w_gamma = gamma_f32 / jnp.sum(gamma_f32)
    gw2 = (gamma_f32 * w_gamma).reshape(C, 1)              # gamma * w_gamma
    bw2 = (beta.astype(jnp.float32) * w_gamma).reshape(C, 1)  # beta * w_gamma

    # (C, C) matrix mapping per-channel sums -> per-channel group means
    # (reduce within group + broadcast back), scaled by 1/(group_size * HW).
    # Uses the TRUE HW so zero padding is statistics-neutral.
    gsz = C // group_num
    gid = jnp.arange(C, dtype=jnp.int32) // gsz
    P = (gid[:, None] == gid[None, :]).astype(jnp.float32) / jnp.float32(gsz * HW)

    half = C // 2
    kernel = functools.partial(_sru_kernel,
                               gate_threshold=float(gate_threshold),
                               eps=float(eps), half=half)

    # Per-step working set: double-buffered in+out blocks + full-size f32/bf16
    # temps (x-cast, rew, rx / output halves) + resident params.
    itemsize = x.dtype.itemsize
    cdt_bytes = 2 if x.dtype == jnp.bfloat16 else 4
    sample_in_bytes = C * HWp * itemsize
    sample_work_bytes = C * HWp * (4 + 3 * cdt_bytes)
    NB = _choose_nb(N, sample_in_bytes, sample_work_bytes)
    grid_n = N // NB

    aux_bytes = (C * C + 2 * C) * 4
    step_bytes = 4 * NB * sample_in_bytes + NB * sample_work_bytes + aux_bytes
    vmem_limit = int(min(max(step_bytes + (4 << 20), 16 << 20), 56 << 20))

    cost = pl.CostEstimate(
        flops=int(N * (10 * C * HWp + 4 * C * C)),
        transcendentals=int(N * C * HWp),                  # sigmoid
        bytes_accessed=int(2 * N * C * HWp * itemsize + aux_bytes),
    )

    out = pl.pallas_call(
        kernel,
        out_shape=jax.ShapeDtypeStruct((N, C, HWp), x.dtype),
        grid=(grid_n,),
        in_specs=[
            pl.BlockSpec((NB, C, HWp), lambda i: (i, 0, 0)),   # NB samples per step
            pl.BlockSpec((C, C), lambda i: (0, 0)),            # P (resident)
            pl.BlockSpec((C, 1), lambda i: (0, 0)),            # gamma*w_gamma (resident)
            pl.BlockSpec((C, 1), lambda i: (0, 0)),            # beta*w_gamma (resident)
        ],
        out_specs=pl.BlockSpec((NB, C, HWp), lambda i: (i, 0, 0)),
        compiler_params=pltpu.CompilerParams(
            dimension_semantics=("parallel",),
            vmem_limit_bytes=vmem_limit,
        ),
        cost_estimate=cost,
    )(x3, P, gw2, bw2)

    if pad:
        out = out[:, :, :HW]
    return out.reshape(N, C, H, W)


def _reference(x, gamma, beta, group_num=16, gate_threshold=0.5, eps=1e-5):
    """Pure-JAX reference mirroring the PyTorch SRU forward (torch_gn=True).
    Also returns the reweight map (for threshold-boundary-aware checking)."""
    N, C, H, W = x.shape
    xg = x.reshape(N, group_num, -1)
    mean = xg.mean(axis=2, keepdims=True)
    var = ((xg - mean) ** 2).mean(axis=2, keepdims=True)     # biased, like GroupNorm
    xn = ((xg - mean) / jnp.sqrt(var + eps)).reshape(N, C, H, W)
    g = gamma.reshape(1, C, 1, 1)
    b = beta.reshape(1, C, 1, 1)
    gn = xn * g + b
    wg = (gamma / jnp.sum(gamma)).reshape(1, C, 1, 1)
    rew = jax.nn.sigmoid(gn * wg)
    w1 = jnp.where(rew > gate_threshold, 1.0, rew)
    w2 = jnp.where(rew > gate_threshold, 0.0, rew)
    x1 = w1 * x
    x2 = w2 * x
    half = C // 2
    y = jnp.concatenate([x1[:, :half] + x2[:, half:],
                         x1[:, half:] + x2[:, :half]], axis=1)
    return y, rew


def _check(out, ref, rew, gate_threshold, C):
    err = jnp.abs(out - ref)
    ok = err <= (2e-4 + 2e-4 * jnp.abs(ref))
    # Elements whose gate value sits numerically on the threshold may flip the
    # select between kernel and reference; exclude those from the hard check.
    half = C // 2
    near = jnp.abs(rew - gate_threshold) < 1e-6
    nh = near[:, :half] | near[:, half:]
    near_out = jnp.concatenate([nh, nh], axis=1)
    assert bool(jnp.all(ok | near_out)), (
        f"mismatch vs reference, max abs err = {float(jnp.max(err))}")


if __name__ == "__main__":
    key = jax.random.PRNGKey(0)
    kx, kg, kb = jax.random.split(key, 3)

    group_num = 16
    gate_threshold = 0.5
    eps = 1e-5
    C = 32
    # torch.nn.GroupNorm initializes weight=1, bias=0; perturb slightly so the
    # affine + gating paths are actually exercised.
    gamma = 1.0 + 0.1 * jax.random.normal(kg, (C,), jnp.float32)
    beta = 0.05 * jax.random.normal(kb, (C,), jnp.float32)

    # 128-aligned spatial size.
    N, H, W = 2, 16, 16
    x = jax.random.normal(kx, (N, C, H, W), jnp.float32)
    out = sru_forward(x, gamma, beta, group_num=group_num,
                      gate_threshold=gate_threshold, eps=eps)
    out = jax.block_until_ready(out)
    assert out.shape == x.shape and out.dtype == x.dtype
    ref, rew = _reference(x, gamma, beta, group_num, gate_threshold, eps)
    _check(out, ref, rew, gate_threshold, C)

    # Non-128-aligned spatial size (exercises the lane-padding path).
    H2, W2 = 14, 14
    x2 = jax.random.normal(kx, (N, C, H2, W2), jnp.float32)
    out2 = sru_forward(x2, gamma, beta, group_num=group_num,
                       gate_threshold=gate_threshold, eps=eps)
    out2 = jax.block_until_ready(out2)
    assert out2.shape == x2.shape and out2.dtype == x2.dtype
    ref2, rew2 = _reference(x2, gamma, beta, group_num, gate_threshold, eps)
    _check(out2, ref2, rew2, gate_threshold, C)

    print("KERNEL_OK")
</pallas_src>

<mosaic_0001>
module attributes {stable_mosaic.version = 11 : i64} {
  func.func @_sru_kernel(%arg0: i32, %arg1: memref<2x32x256xf32, #tpu.memory_space<vmem>>, %arg2: memref<32x32xf32, #tpu.memory_space<vmem>>, %arg3: memref<32x1xf32, #tpu.memory_space<vmem>>, %arg4: memref<32x1xf32, #tpu.memory_space<vmem>>, %arg5: memref<2x32x256xf32, #tpu.memory_space<vmem>>) attributes {dimension_semantics = [#tpu.dimension_semantics<parallel>], iteration_bounds = array<i64: 1>, scalar_prefetch = 0 : i64, scratch_operands = 0 : i64, tpu.core_type = #tpu.core_type<tc>, window_params = [{transform_indices = @transform_0, window_bounds = array<i64: 2, 32, 256>}, {pipeline_mode = #tpu.pipeline_mode<synchronous>, transform_indices = @transform_1, window_bounds = array<i64: 32, 32>}, {pipeline_mode = #tpu.pipeline_mode<synchronous>, transform_indices = @transform_2, window_bounds = array<i64: 32, 1>}, {pipeline_mode = #tpu.pipeline_mode<synchronous>, transform_indices = @transform_3, window_bounds = array<i64: 32, 1>}, {transform_indices = @transform_4, window_bounds = array<i64: 2, 32, 256>}]} {
    %c0 = arith.constant 0 : index
    %c0_0 = arith.constant 0 : index
    %c0_1 = arith.constant 0 : index
    %0 = vector.load %arg1[%c0, %c0_0, %c0_1] : memref<2x32x256xf32, #tpu.memory_space<vmem>>, vector<2x32x256xf32>
    %cst = arith.constant dense<0.000000e+00> : vector<2x32xf32>
    %1 = vector.multi_reduction <add>, %0, %cst [2] : vector<2x32x256xf32> to vector<2x32xf32>
    %2 = vector.shape_cast %1 : vector<2x32xf32> to vector<2x32x1xf32>
    %3 = arith.mulf %0, %0 : vector<2x32x256xf32>
    %cst_2 = arith.constant dense<0.000000e+00> : vector<2x32xf32>
    %4 = vector.multi_reduction <add>, %3, %cst_2 [2] : vector<2x32x256xf32> to vector<2x32xf32>
    %5 = vector.shape_cast %4 : vector<2x32xf32> to vector<2x32x1xf32>
    %6 = tpu.concatenate %2, %5 in 2 : vector<2x32x1xf32>, vector<2x32x1xf32> -> vector<2x32x2xf32>
    %c0_3 = arith.constant 0 : index
    %c0_4 = arith.constant 0 : index
    %7 = vector.load %arg2[%c0_3, %c0_4] : memref<32x32xf32, #tpu.memory_space<vmem>>, vector<32x32xf32>
    %c0_5 = arith.constant 0 : index
    %c0_6 = arith.constant 0 : index
    %8 = vector.load %arg3[%c0_5, %c0_6] : memref<32x1xf32, #tpu.memory_space<vmem>>, vector<32x1xf32>
    %c0_7 = arith.constant 0 : index
    %c0_8 = arith.constant 0 : index
    %9 = vector.load %arg4[%c0_7, %c0_8] : memref<32x1xf32, #tpu.memory_space<vmem>>, vector<32x1xf32>
    %10 = vector.extract_strided_slice %6 {offsets = [0, 0, 0], sizes = [1, 32, 2], strides = [1, 1, 1]} : vector<2x32x2xf32> to vector<1x32x2xf32>
    %11 = vector.shape_cast %10 : vector<1x32x2xf32> to vector<32x2xf32>
    %cst_9 = arith.constant dense<0.000000e+00> : vector<32x2xf32>
    %12 = tpu.matmul %7, %11, %cst_9 {dimension_numbers = #tpu.dot_dimension_numbers<[1], [0], [0], [1], [0, 0, 1, 1], [], []>} : vector<32x32xf32>, vector<32x2xf32>, vector<32x2xf32> -> vector<32x2xf32>
    %13 = vector.extract_strided_slice %12 {offsets = [0, 0], sizes = [32, 1], strides = [1, 1]} : vector<32x2xf32> to vector<32x1xf32>
    %14 = vector.extract_strided_slice %12 {offsets = [0, 1], sizes = [32, 1], strides = [1, 1]} : vector<32x2xf32> to vector<32x1xf32>
    %15 = arith.mulf %13, %13 : vector<32x1xf32>
    %16 = arith.subf %14, %15 : vector<32x1xf32>
    %cst_10 = arith.constant 0.000000e+00 : f32
    %17 = vector.broadcast %cst_10 : f32 to vector<32x1xf32>
    %18 = arith.maximumf %16, %17 : vector<32x1xf32>
    %cst_11 = arith.constant 9.99999974E-6 : f32
    %19 = vector.broadcast %cst_11 : f32 to vector<32x1xf32>
    %20 = arith.addf %18, %19 : vector<32x1xf32>
    %21 = math.rsqrt %20 : vector<32x1xf32>
    %22 = arith.mulf %21, %8 : vector<32x1xf32>
    %23 = arith.mulf %13, %22 : vector<32x1xf32>
    %24 = arith.subf %9, %23 : vector<32x1xf32>
    %25 = vector.extract_strided_slice %6 {offsets = [1, 0, 0], sizes = [1, 32, 2], strides = [1, 1, 1]} : vector<2x32x2xf32> to vector<1x32x2xf32>
    %26 = vector.shape_cast %25 : vector<1x32x2xf32> to vector<32x2xf32>
    %cst_12 = arith.constant dense<0.000000e+00> : vector<32x2xf32>
    %27 = tpu.matmul %7, %26, %cst_12 {dimension_numbers = #tpu.dot_dimension_numbers<[1], [0], [0], [1], [0, 0, 1, 1], [], []>} : vector<32x32xf32>, vector<32x2xf32>, vector<32x2xf32> -> vector<32x2xf32>
    %28 = vector.extract_strided_slice %27 {offsets = [0, 0], sizes = [32, 1], strides = [1, 1]} : vector<32x2xf32> to vector<32x1xf32>
    %29 = vector.extract_strided_slice %27 {offsets = [0, 1], sizes = [32, 1], strides = [1, 1]} : vector<32x2xf32> to vector<32x1xf32>
    %30 = arith.mulf %28, %28 : vector<32x1xf32>
    %31 = arith.subf %29, %30 : vector<32x1xf32>
    %cst_13 = arith.constant 0.000000e+00 : f32
    %32 = vector.broadcast %cst_13 : f32 to vector<32x1xf32>
    %33 = arith.maximumf %31, %32 : vector<32x1xf32>
    %cst_14 = arith.constant 9.99999974E-6 : f32
    %34 = vector.broadcast %cst_14 : f32 to vector<32x1xf32>
    %35 = arith.addf %33, %34 : vector<32x1xf32>
    %36 = math.rsqrt %35 : vector<32x1xf32>
    %37 = arith.mulf %36, %8 : vector<32x1xf32>
    %38 = arith.mulf %28, %37 : vector<32x1xf32>
    %39 = arith.subf %9, %38 : vector<32x1xf32>
    %40 = vector.shape_cast %22 : vector<32x1xf32> to vector<1x32x1xf32>
    %41 = vector.shape_cast %37 : vector<32x1xf32> to vector<1x32x1xf32>
    %42 = tpu.concatenate %40, %41 in 0 : vector<1x32x1xf32>, vector<1x32x1xf32> -> vector<2x32x1xf32>
    %43 = vector.shape_cast %24 : vector<32x1xf32> to vector<1x32x1xf32>
    %44 = vector.shape_cast %39 : vector<32x1xf32> to vector<1x32x1xf32>
    %45 = tpu.concatenate %43, %44 in 0 : vector<1x32x1xf32>, vector<1x32x1xf32> -> vector<2x32x1xf32>
    %46 = vector.broadcast %42 : vector<2x32x1xf32> to vector<2x32x256xf32>
    %47 = arith.mulf %0, %46 : vector<2x32x256xf32>
    %48 = vector.broadcast %45 : vector<2x32x1xf32> to vector<2x32x256xf32>
    %49 = arith.addf %47, %48 : vector<2x32x256xf32>
    %50 = arith.negf %49 : vector<2x32x256xf32>
    %51 = math.exp %50 : vector<2x32x256xf32>
    %cst_15 = arith.constant 1.000000e+00 : f32
    %52 = vector.broadcast %cst_15 : f32 to vector<2x32x256xf32>
    %53 = arith.addf %52, %51 : vector<2x32x256xf32>
    %54 = arith.divf %52, %53 : vector<2x32x256xf32>
    %55 = arith.mulf %54, %0 : vector<2x32x256xf32>
    %56 = vector.extract_strided_slice %54 {offsets = [0, 0, 0], sizes = [2, 16, 256], strides = [1, 1, 1]} : vector<2x32x256xf32> to vector<2x16x256xf32>
    %57 = vector.extract_strided_slice %54 {offsets = [0, 16, 0], sizes = [2, 16, 256], strides = [1, 1, 1]} : vector<2x32x256xf32> to vector<2x16x256xf32>
    %58 = vector.extract_strided_slice %55 {offsets = [0, 0, 0], sizes = [2, 16, 256], strides = [1, 1, 1]} : vector<2x32x256xf32> to vector<2x16x256xf32>
    %59 = vector.extract_strided_slice %55 {offsets = [0, 16, 0], sizes = [2, 16, 256], strides = [1, 1, 1]} : vector<2x32x256xf32> to vector<2x16x256xf32>
    %60 = vector.extract_strided_slice %0 {offsets = [0, 0, 0], sizes = [2, 16, 256], strides = [1, 1, 1]} : vector<2x32x256xf32> to vector<2x16x256xf32>
    %61 = vector.extract_strided_slice %0 {offsets = [0, 16, 0], sizes = [2, 16, 256], strides = [1, 1, 1]} : vector<2x32x256xf32> to vector<2x16x256xf32>
    %cst_16 = arith.constant 5.000000e-01 : f32
    %62 = vector.broadcast %cst_16 : f32 to vector<2x16x256xf32>
    %63 = arith.cmpf ogt, %56, %62 : vector<2x16x256xf32>
    %64 = arith.select %63, %60, %58 : vector<2x16x256xi1>, vector<2x16x256xf32>
    %cst_17 = arith.constant 5.000000e-01 : f32
    %65 = vector.broadcast %cst_17 : f32 to vector<2x16x256xf32>
    %66 = arith.cmpf ogt, %57, %65 : vector<2x16x256xf32>
    %cst_18 = arith.constant 0.000000e+00 : f32
    %67 = vector.broadcast %cst_18 : f32 to vector<2x16x256xf32>
    %68 = arith.select %66, %67, %59 : vector<2x16x256xi1>, vector<2x16x256xf32>
    %69 = arith.addf %64, %68 : vector<2x16x256xf32>
    %c0_19 = arith.constant 0 : index
    %c0_20 = arith.constant 0 : index
    %c0_21 = arith.constant 0 : index
    %70 = vector.load %arg5[%c0_19, %c0_20, %c0_21] : memref<2x32x256xf32, #tpu.memory_space<vmem>>, vector<2x16x256xf32>
    tpu.vector_store %arg5[%c0_19, %c0_20, %c0_21], %69 {strides = array<i32>} : memref<2x32x256xf32, #tpu.memory_space<vmem>>, vector<2x16x256xf32>,
    %cst_22 = arith.constant 5.000000e-01 : f32
    %71 = vector.broadcast %cst_22 : f32 to vector<2x16x256xf32>
    %72 = arith.cmpf ogt, %57, %71 : vector<2x16x256xf32>
    %73 = arith.select %72, %61, %59 : vector<2x16x256xi1>, vector<2x16x256xf32>
    %cst_23 = arith.constant 5.000000e-01 : f32
    %74 = vector.broadcast %cst_23 : f32 to vector<2x16x256xf32>
    %75 = arith.cmpf ogt, %56, %74 : vector<2x16x256xf32>
    %cst_24 = arith.constant 0.000000e+00 : f32
    %76 = vector.broadcast %cst_24 : f32 to vector<2x16x256xf32>
    %77 = arith.select %75, %76, %58 : vector<2x16x256xi1>, vector<2x16x256xf32>
    %78 = arith.addf %73, %77 : vector<2x16x256xf32>
    %c0_25 = arith.constant 0 : index
    %c16 = arith.constant 16 : index
    %c0_26 = arith.constant 0 : index
    %79 = vector.load %arg5[%c0_25, %c16, %c0_26] : memref<2x32x256xf32, #tpu.memory_space<vmem>>, vector<2x16x256xf32>
    tpu.vector_store %arg5[%c0_25, %c16, %c0_26], %78 {strides = array<i32>} : memref<2x32x256xf32, #tpu.memory_space<vmem>>, vector<2x16x256xf32>,
    return
  }
  func.func @transform_0(%arg0: i32) -> (i32, i32, i32) {
    %c0_i32 = arith.constant 0 : i32
    %c0_i32_0 = arith.constant 0 : i32
    %c0_i32_1 = arith.constant 0 : i32
    return %arg0, %c0_i32, %c0_i32_0 : i32, i32, i32
  }
  func.func @transform_1(%arg0: i32) -> (i32, i32) {
    %c0_i32 = arith.constant 0 : i32
    %c0_i32_0 = arith.constant 0 : i32
    %c0_i32_1 = arith.constant 0 : i32
    return %c0_i32, %c0_i32_0 : i32, i32
  }
  func.func @transform_2(%arg0: i32) -> (i32, i32) {
    %c0_i32 = arith.constant 0 : i32
    %c0_i32_0 = arith.constant 0 : i32
    %c0_i32_1 = arith.constant 0 : i32
    return %c0_i32, %c0_i32_0 : i32, i32
  }
  func.func @transform_3(%arg0: i32) -> (i32, i32) {
    %c0_i32 = arith.constant 0 : i32
    %c0_i32_0 = arith.constant 0 : i32
    %c0_i32_1 = arith.constant 0 : i32
    return %c0_i32, %c0_i32_0 : i32, i32
  }
  func.func @transform_4(%arg0: i32) -> (i32, i32, i32) {
    %c0_i32 = arith.constant 0 : i32
    %c0_i32_0 = arith.constant 0 : i32
    %c0_i32_1 = arith.constant 0 : i32
    return %arg0, %c0_i32, %c0_i32_0 : i32, i32, i32
  }
}

</mosaic_0001>

<bundles_post_ra>
// kernel: sru_forward.1
= control target key start
LH: loop header
LB: loop body
LE: loop exit
PB: predicated region body
PF: predicated region fallthrough
CT: control target
= control target key end

     0   :  { %vm118_vm0 = vcmask 261120   ;;  %vm97_vm1 = vcmask 7168   ;;  %s917_s28 = smov 1   ;;  %s1308_s0 = inlined_call_operand.vmem [shape: f32[2,32,256], index: 0, kind: input, shape index: {}]   ;;  %s1309_s1 = inlined_call_operand.vmem [shape: f32[32,32], index: 1, kind: input, shape index: {}]   ;;  %s1310_s2 = inlined_call_operand.vmem [shape: f32[32,1], index: 2, kind: input, shape index: {}]   ;;  %s1311_s3 = inlined_call_operand.vmem [shape: f32[32,1], index: 3, kind: input, shape index: {}]   ;;  %s1312_s4 = inlined_call_operand.vmem [shape: f32[2,32,256], index: 4, kind: output, shape index: {}]  }
   0x1   :  { %v949_v0 = vld [vmem:[%s1308_s0 + $0x40] sm:$0xff]  ;;  %v954_v1 = vld [vmem:[%s1308_s0 + $0x48] sm:$0xff]  ;;  %v971_v5 = vld [vmem:[%s1308_s0 + $0x50] sm:$0xff] }
   0x2   :  { %v959_v2 = vld [vmem:[%s1308_s0] sm:$0xff]  ;;  %v45_v3 = vadd.f32 %v954_v1, %v949_v0  ;;  %v966_v4 = vld [vmem:[%s1308_s0 + $0x8] sm:$0xff]  ;;  %v976_v6 = vld [vmem:[%s1308_s0 + $0x58] sm:$0xff]  ;;  %v67_v17 = vmul.f32 %v971_v5, %v971_v5  ;;  %v65_v20 = vmul.f32 %v949_v0, %v949_v0  ;;  %v66_v21 = vmul.f32 %v954_v1, %v954_v1 }
   0x3   :  { %v33_v7 = vadd.f32 %v966_v4, %v959_v2  ;;  %v983_v8 = vld [vmem:[%s1308_s0 + $0x10] sm:$0xff]  ;;  %v988_v9 = vld [vmem:[%s1308_s0 + $0x18] sm:$0xff]  ;;  %v48_v10 = vadd.f32 %v976_v6, %v971_v5  ;;  %v57_v14 = vmul.f32 %v959_v2, %v959_v2  ;;  %v58_v15 = vmul.f32 %v966_v4, %v966_v4  ;;  %v1023_v26 = vld [vmem:[%s1308_s0 + $0x20] sm:$0xff] }
   0x4   :  { %46 = vadd.xlane.f32.xlu1 %v45_v3  ;;  %v59_v11 = vmul.f32 %v983_v8, %v983_v8  ;;  %v60_v12 = vmul.f32 %v988_v9, %v988_v9  ;;  %v36_v13 = vadd.f32 %v988_v9, %v983_v8  ;;  %v68_v18 = vmul.f32 %v976_v6, %v976_v6  ;;  %v1013_v24 = vld [vmem:[%s1308_s0 + $0x30] sm:$0xff]  ;;  %v1018_v25 = vld [vmem:[%s1308_s0 + $0x38] sm:$0xff]  ;;  %v1028_v27 = vld [vmem:[%s1308_s0 + $0x28] sm:$0xff] }
   0x5   :  { %34 = vadd.xlane.f32.xlu0 %v33_v7  ;;  %v73_v19 = vadd.f32 %v58_v15, %v57_v14  ;;  %v85_v23 = vadd.f32 %v66_v21, %v65_v20  ;;  %v42_v28 = vadd.f32 %v1018_v25, %v1013_v24  ;;  %v39_v29 = vadd.f32 %v1028_v27, %v1023_v26  ;;  %v1037_v30 = vld [vmem:[%s1308_s0 + $0x70] sm:$0xff]  ;;  %v1042_v31 = vld [vmem:[%s1308_s0 + $0x78] sm:$0xff]  ;;  %v1047_v32 = vld [vmem:[%s1308_s0 + $0x60] sm:$0xff] }
   0x6   :  { %v76_v16 = vadd.f32 %v60_v12, %v59_v11  ;;  %v88_v22 = vadd.f32 %v68_v18, %v67_v17  ;;  %v1052_v33 = vld [vmem:[%s1308_s0 + $0x68] sm:$0xff]  ;;  %v54_v34 = vadd.f32 %v1042_v31, %v1037_v30  ;;  %v63_v35 = vmul.f32 %v1013_v24, %v1013_v24  ;;  %v106_v48 = vld [vmem:[%s1309_s1] sm:$0xff] }
   0x7   :  { %v64_v36 = vmul.f32 %v1018_v25, %v1018_v25  ;;  %v51_v37 = vadd.f32 %v1052_v33, %v1047_v32  ;;  %v61_v38 = vmul.f32 %v1023_v26, %v1023_v26  ;;  %v62_v39 = vmul.f32 %v1028_v27, %v1028_v27  ;;  %793 = vmatprep.mubr.msk.f32.mxu0 %vm118_vm0, %v106_v48  ;;  %v107_v20 = vld [vmem:[%s1309_s1 + $0x8] sm:$0xff] }
   0x8   :  { %49 = vadd.xlane.f32.xlu1 %v48_v10  ;;  %v71_v41 = vmul.f32 %v1037_v30, %v1037_v30  ;;  %v72_v42 = vmul.f32 %v1042_v31, %v1042_v31  ;;  %v69_v44 = vmul.f32 %v1047_v32, %v1047_v32  ;;  %v70_v45 = vmul.f32 %v1052_v33, %v1052_v33 }
   0x9   :  { %37 = vadd.xlane.f32.xlu0 %v36_v13  ;;  %v82_v40 = vadd.f32 %v64_v36, %v63_v35  ;;  %v79_v43 = vadd.f32 %v62_v39, %v61_v38  ;;  %807 = vmatprep.mubr.msk.f32.mxu1 %vm118_vm0, %v106_v48 }
   0xa   :  { %v94_v46 = vadd.f32 %v72_v42, %v71_v41  ;;  %v91_v47 = vadd.f32 %v70_v45, %v69_v44 }
   0xc   :  { %77 = vadd.xlane.f32.xlu1 %v76_v16 }
   0xd   :  { %74 = vadd.xlane.f32.xlu0 %v73_v19 }
  0x10   :  { %89 = vadd.xlane.f32.xlu1 %v88_v22  ;;  %v108_v22 = vld [vmem:[%s1309_s1 + $0x10] sm:$0xff] }
  0x11   :  { %86 = vadd.xlane.f32.xlu0 %v85_v23  ;;  %v109_v23 = vld [vmem:[%s1309_s1 + $0x18] sm:$0xff] }
  0x14   :  { %43 = vadd.xlane.f32.xlu1 %v42_v28 }
  0x15   :  { %40 = vadd.xlane.f32.xlu0 %v39_v29 }
  0x18   :  { %55 = vadd.xlane.f32.xlu1 %v54_v34 }
  0x19   :  { %52 = vadd.xlane.f32.xlu0 %v51_v37 }
  0x1c   :  { %83 = vadd.xlane.f32.xlu1 %v82_v40 }
  0x1d   :  { %80 = vadd.xlane.f32.xlu0 %v79_v43 }
  0x20   :  { %95 = vadd.xlane.f32.xlu1 %v94_v46 }
  0x21   :  { %92 = vadd.xlane.f32.xlu0 %v91_v47  ;;  %v110_v47 = vld [vmem:[%s1310_s2] sm:$0xff] }
  0x91   :  { %v47_v49 = vpop.xlane.xlu1 %46 }
  0x92   :  { %v35_v50 = vpop.xlane.xlu0 %34 }
  0x95   :  { %v50_v51 = vpop.xlane.xlu1 %49 }
  0x96   :  { %v38_v52 = vpop.xlane.xlu0 %37 }
  0x99   :  { %v78_v53 = vpop.xlane.xlu1 %77 }
  0x9a   :  { %v99_v54 = vsel %vm97_vm1, %v38_v52, %v78_v53  ;;  %v75_v55 = vpop.xlane.xlu0 %74  ;;  %v918_v52 = vmov 1  }
  0x9b   :  { %v98_v56 = vsel %vm97_vm1, %v35_v50, %v75_v55  ;;  %v111_v50 = vld [vmem:[%s1310_s2 + $0x8] sm:$0xff]  ;;  %834 = vset.pattern.permute.xlu1 %v918_v52  ;;  %833 = vset.pattern.permute.xlu0 %v918_v52 }
  0x9c   :  { %v813_v57 = vpack.c.bf16 %v99_v54, %v98_v56 }
  0x9d   :  { %v90_v58 = vpop.xlane.xlu1 %89 }
  0x9e   :  { %v103_v59 = vsel %vm97_vm1, %v50_v51, %v90_v58  ;;  %814 = vmatprep.subr.bf16.mxu0 %v813_v57  ;;  %v87_v60 = vpop.xlane.xlu0 %86  ;;  %v113_v51 = vld [vmem:[%s1310_s2 + $0x18] sm:$0xff] }
  0x9f   :  { %v102_v61 = vsel %vm97_vm1, %v47_v49, %v87_v60  ;;  %816 = vmatpush3.bf16.msra.mxu0 %v813_v57  ;;  %v112_v49 = vld [vmem:[%s1310_s2 + $0x10] sm:$0xff]  ;;  %s919_s2 = smov 127  }
  0xa0   :  { %v821_v62 = vpack.c.bf16 %v103_v59, %v102_v61 }
  0xa1   :  { %v44_v63 = vpop.xlane.xlu1 %43 }
  0xa2   :  { %822 = vmatprep.subr.bf16.mxu1 %v821_v62  ;;  %v41_v3 = vpop.xlane.xlu0 %40 }
  0xa3   :  { %824 = vmatpush3.bf16.msra.mxu1 %v821_v62 }
  0xa5   :  { %v56_v7 = vpop.xlane.xlu1 %55 }
  0xa6   :  { %v53_v10 = vpop.xlane.xlu0 %52 }
  0xa9   :  { %v84_v11 = vpop.xlane.xlu1 %83 }
  0xaa   :  { %v101_v12 = vsel %vm97_vm1, %v44_v63, %v84_v11  ;;  %v81_v13 = vpop.xlane.xlu0 %80 }
  0xab   :  { %v100_v14 = vsel %vm97_vm1, %v41_v3, %v81_v13 }
  0xac   :  { %v817_v15 = vpack.c.bf16 %v101_v12, %v100_v14 }
  0xad   :  { %v96_v16 = vpop.xlane.xlu1 %95 }
  0xae   :  { %v105_v17 = vsel %vm97_vm1, %v56_v7, %v96_v16  ;;  %818 = vmatprep.subr.bf16.mxu0 %v817_v15  ;;  %v93_v18 = vpop.xlane.xlu0 %92 }
  0xaf   :  { %v104_v19 = vsel %vm97_vm1, %v53_v10, %v93_v18  ;;  %820 = vmatpush3.bf16.msra.mxu0 %v817_v15 }
  0xb0   :  { %v825_v21 = vpack.c.bf16 %v105_v17, %v104_v19 }
  0xb2   :  { %794 = vmatmul.mubr.msk.f32.vlgmr.msra.gmra.mrb[0].mxu0 %vm118_vm0, %v107_v20  ;;  %826 = vmatprep.subr.bf16.mxu1 %v825_v21 }
  0xb3   :  { %828 = vmatpush3.bf16.msra.mxu1 %v825_v21  ;;  %796 = vmatprep.mubr.msk.f32.mxu0 %vm118_vm0, %v108_v22 }
  0xb6   :  { %808 = vmatmul.mubr.msk.f32.vlgmr.msra.gmra.mrb[0].mxu1 %vm118_vm0, %v107_v20  ;;  %797 = vmatmul.mubr.msk.f32.gmra.mrb[2].mxu0 %vm118_vm0, %v109_v23 }
  0xb7   :  { %810 = vmatprep.mubr.msk.f32.mxu1 %vm118_vm0, %v108_v22 }
  0xba   :  { %811 = vmatmul.mubr.msk.f32.gmra.mrb[2].mxu1 %vm118_vm0, %v109_v23 }
 0x185   :  { %v1102_v28 = vpop.f32.mrb[0].mxu0 }
 0x186   :  { %v217_v29 = vmul.f32 %v1102_v28, %v1102_v28  ;;  %v1106_v34 = vpop.f32.mrb[1].mxu0 }
 0x187   :  { %v216_v35 = vmul.f32 %v1106_v34, %v1106_v34 }
 0x188   :  { %226 = vrot.lane.b32.xlu1 %v217_v29, %s917_s28 }
 0x189   :  { %224 = vrot.lane.b32.xlu0 %v216_v35, %s917_s28  ;;  %v1112_v36 = vpop.f32.mrb[0].mxu1  ;;  %v1114_v37 = vpop.f32.mrb[2].mxu0 }
 0x18a   :  { %v382_v38 = vmul.f32 %v1112_v36, %v1112_v36  ;;  %v1118_v39 = vpop.f32.mrb[1].mxu1  ;;  %v1120_v40 = vpop.f32.mrb[3].mxu0  ;;  %v219_v42 = vmul.f32 %v1114_v37, %v1114_v37 }
 0x18b   :  { %v381_v41 = vmul.f32 %v1118_v39, %v1118_v39  ;;  %v218_v46 = vmul.f32 %v1120_v40, %v1120_v40 }
 0x18c   :  { %391 = vrot.lane.b32.xlu1 %v382_v38, %s917_s28 }
 0x18d   :  { %389 = vrot.lane.b32.xlu0 %v381_v41, %s917_s28  ;;  %v1128_v43 = vpop.f32.mrb[2].mxu1 }
 0x18e   :  { %v1130_v44 = vpop.f32.mrb[3].mxu1  ;;  %v384_v48 = vmul.f32 %v1128_v43, %v1128_v43 }
 0x18f   :  { %v383_v45 = vmul.f32 %v1130_v44, %v1130_v44 }
 0x190   :  { %230 = vrot.lane.b32.xlu1 %v219_v42, %s917_s28 }
 0x191   :  { %393 = vrot.lane.b32.xlu0 %v383_v45, %s917_s28 }
 0x194   :  { %228 = vrot.lane.b32.xlu1 %v218_v46, %s917_s28 }
 0x195   :  { %256 = vrot.lane.b32.xlu0 %v110_v47, %s917_s28 }
 0x198   :  { %395 = vrot.lane.b32.xlu1 %v384_v48, %s917_s28 }
 0x199   :  { %260 = vrot.lane.b32.xlu0 %v112_v49, %s917_s28 }
 0x19c   :  { %258 = vrot.lane.b32.xlu1 %v111_v50, %s917_s28 }
 0x1a0   :  { %262 = vrot.lane.b32.xlu1 %v113_v51, %s917_s28 }
 0x1fa   :  { %v227_v53 = vpop.permute.xlu1 %226 }
 0x1fb   :  { %v237_v54 = vsub.f32 %v1102_v28, %v227_v53  ;;  %v225_v55 = vpop.permute.xlu0 %224 }
 0x1fc   :  { %v236_v56 = vsub.f32 %v1106_v34, %v225_v55 }
 0x1fd   :  { %v241_v57 = vmax.f32 %v237_v54, 0.0 }
 0x1fe   :  { %v240_v58 = vmax.f32 %v236_v56, 0.0  ;;  %v392_v59 = vpop.permute.xlu1 %391 }
 0x1ff   :  { %v402_v60 = vsub.f32 %v1112_v36, %v392_v59  ;;  %v390_v61 = vpop.permute.xlu0 %389  ;;  %v245_v62 = vadd.f32 1e-05, %v241_v57 }
 0x200   :  { %v244_v63 = vadd.f32 1e-05, %v240_v58  ;;  %v401_v3 = vsub.f32 %v1118_v39, %v390_v61 }
 0x201   :  { %v406_v7 = vmax.f32 %v402_v60, 0.0 }
 0x202   :  { %837 = vrsqrt.f32 %v244_v63  ;;  %v405_v10 = vmax.f32 %v401_v3, 0.0  ;;  %v231_v11 = vpop.permute.xlu1 %230 }
 0x203   :  { %v410_v12 = vadd.f32 1e-05, %v406_v7  ;;  %v239_v13 = vsub.f32 %v1114_v37, %v231_v11  ;;  %v394_v14 = vpop.permute.xlu0 %393  ;;  %839 = vrsqrt.f32 %v245_v62  ;;  %v920_v7 = vmov 0   ;;  %v115_v11 = vld [vmem:[%s1311_s3 + $0x8] sm:$0xff] }
 0x204   :  { %v409_v15 = vadd.f32 1e-05, %v405_v10  ;;  %v403_v16 = vsub.f32 %v1130_v44, %v394_v14 }
 0x205   :  { %841 = vrsqrt.f32 %v410_v12  ;;  %v243_v17 = vmax.f32 %v239_v13, 0.0 }
 0x206   :  { %843 = vrsqrt.f32 %v409_v15  ;;  %v229_v18 = vpop.permute.xlu1 %228  ;;  %v407_v20 = vmax.f32 %v403_v16, 0.0 }
 0x207   :  { %v247_v19 = vadd.f32 1e-05, %v243_v17  ;;  %v238_v21 = vsub.f32 %v1120_v40, %v229_v18  ;;  %v257_v29 = vpop.permute.xlu0 %256 }
 0x208   :  { %v411_v35 = vadd.f32 1e-05, %v407_v20 }
 0x209   :  { %v242_v22 = vmax.f32 %v238_v21, 0.0  ;;  %845 = vrsqrt.f32 %v247_v19  ;;  %v114_v19 = vld [vmem:[%s1311_s3] sm:$0xff] }
 0x20a   :  { %v396_v23 = vpop.permute.xlu1 %395 }
 0x20b   :  { %v246_v38 = vadd.f32 1e-05, %v242_v22  ;;  %v404_v41 = vsub.f32 %v1128_v43, %v396_v23  ;;  %v261_v59 = vpop.permute.xlu0 %260 }
 0x20c   :  { %v838_v42 = vpop.eup %837 }
 0x20d   :  { %847 = vrsqrt.f32 %v246_v38  ;;  %v408_v45 = vmax.f32 %v404_v41, 0.0  ;;  %v268_v46 = vmul.f32 %v838_v42, %v257_v29  ;;  %v840_v47 = vpop.eup %839 }
 0x20e   :  { %v259_v48 = vpop.permute.xlu1 %258  ;;  %849 = vrsqrt.f32 %v411_v35 }
 0x20f   :  { %v842_v49 = vpop.eup %841  ;;  %v412_v50 = vadd.f32 1e-05, %v408_v45  ;;  %v269_v51 = vmul.f32 %v840_v47, %v259_v48  ;;  %276 = vrot.lane.b32.xlu0 %v268_v46, %s919_s2 }
 0x210   :  { %v844_v52 = vpop.eup %843  ;;  %v418_v54 = vmul.f32 %v842_v49, %v259_v48 }
 0x211   :  { %851 = vrsqrt.f32 %v412_v50  ;;  %v417_v53 = vmul.f32 %v844_v52, %v257_v29  ;;  %278 = vrot.lane.b32.xlu1 %v269_v51, %s919_s2 }
 0x212   :  { %v263_v56 = vpop.permute.xlu1 %262 }
 0x213   :  { %425 = vrot.lane.b32.xlu0 %v417_v53, %s919_s2  ;;  %v846_v55 = vpop.eup %845 }
 0x214   :  { %v271_v58 = vmul.f32 %v846_v55, %v263_v56 }
 0x215   :  { %427 = vrot.lane.b32.xlu1 %v418_v54, %s919_s2 }
 0x217   :  { %v848_v57 = vpop.eup %847 }
 0x218   :  { %v270_v60 = vmul.f32 %v848_v57, %v261_v59  ;;  %v850_v61 = vpop.eup %849 }
 0x219   :  { %282 = vrot.lane.b32.xlu1 %v271_v58, %s919_s2  ;;  %v419_v3 = vmul.f32 %v850_v61, %v261_v59 }
 0x21a   :  { %280 = vrot.lane.b32.xlu0 %v270_v60, %s919_s2 }
 0x21b   :  { %v852_v62 = vpop.eup %851 }
 0x21c   :  { %v420_v63 = vmul.f32 %v852_v62, %v263_v56 }
 0x21e   :  { %431 = vrot.lane.b32.xlu1 %v420_v63, %s919_s2  ;;  %429 = vrot.lane.b32.xlu0 %v419_v3, %s919_s2 }
 0x222   :  { %450 = vperm.xlu1 %834, %v269_v51   ;;  %446 = vperm.xlu0 %833, %v268_v46  }
 0x226   :  { %462 = vperm.xlu1 %834, %v417_v53   ;;  %458 = vperm.xlu0 %833, %v271_v58  }
 0x22a   :  { %454 = vperm.xlu1 %834, %v270_v60   ;;  %466 = vperm.xlu0 %833, %v418_v54  }
 0x22e   :  { %470 = vperm.xlu1 %834, %v419_v3   ;;  %474 = vperm.xlu0 %833, %v420_v63  }
 0x232   :  { %835 = vset.pattern.permute.xlu0 %v920_v7  ;;  %836 = vset.pattern.permute.xlu1 %v920_v7 }
 0x281   :  { %v277_v10 = vpop.permute.xlu0 %276 }
 0x282   :  { %v288_v20 = vmul.f32 %v277_v10, %v1106_v34  ;;  %v116_v34 = vld [vmem:[%s1311_s3 + $0x10] sm:$0xff] }
 0x283   :  { %v279_v12 = vpop.permute.xlu1 %278 }
 0x284   :  { %v289_v13 = vmul.f32 %v1102_v28, %v279_v12  ;;  %v292_v29 = vsub.f32 %v114_v19, %v288_v20 }
 0x285   :  { %v426_v14 = vpop.permute.xlu0 %425 }
 0x286   :  { %v293_v15 = vsub.f32 %v115_v11, %v289_v13  ;;  %v437_v16 = vmul.f32 %v426_v14, %v1118_v39 }
 0x287   :  { %v428_v17 = vpop.permute.xlu1 %427 }
 0x288   :  { %v438_v18 = vmul.f32 %v1112_v36, %v428_v17  ;;  %500 = vperm.xlu0 %835, %v293_v15   ;;  %v441_v21 = vsub.f32 %v114_v19, %v437_v16  ;;  %v117_v36 = vld [vmem:[%s1311_s3 + $0x18] sm:$0xff] }
 0x28a   :  { %v442_v22 = vsub.f32 %v115_v11, %v438_v18 }
 0x28b   :  { %v283_v23 = vpop.permute.xlu1 %282 }
 0x28c   :  { %520 = vperm.xlu1 %836, %v442_v22   ;;  %515 = vperm.xlu0 %835, %v441_v21   ;;  %v281_v28 = vpop.permute.xlu0 %280  ;;  %v291_v35 = vmul.f32 %v1114_v37, %v283_v23 }
 0x28d   :  { %v290_v42 = vmul.f32 %v281_v28, %v1120_v40 }
 0x28e   :  { %v295_v41 = vsub.f32 %v117_v36, %v291_v35 }
 0x28f   :  { %v294_v37 = vsub.f32 %v116_v34, %v290_v42 }
 0x290   :  { %495 = vperm.xlu1 %836, %v292_v29   ;;  %v430_v39 = vpop.permute.xlu0 %429  ;;  %v432_v45 = vpop.permute.xlu1 %431 }
 0x291   :  { %v439_v38 = vmul.f32 %v430_v39, %v1130_v44  ;;  %v440_v47 = vmul.f32 %v1128_v43, %v432_v45 }
 0x293   :  { %v443_v46 = vsub.f32 %v116_v34, %v439_v38  ;;  %v444_v48 = vsub.f32 %v117_v36, %v440_v47 }
 0x294   :  { %510 = vperm.xlu1 %836, %v295_v41  }
 0x295   :  { %525 = vperm.xlu0 %835, %v443_v46  }
 0x298   :  { %505 = vperm.xlu1 %836, %v294_v37  }
 0x29c   :  { %530 = vperm.xlu1 %836, %v444_v48  }
 0x2a1   :  { %v447_v49 = vpop.permute.xlu0 %446  ;;  %v451_v50 = vpop.permute.xlu1 %450 }
 0x2a2   :  { %v479_v40 = vmul.f32 %v451_v50, %v983_v8  ;;  %v480_v55 = vmul.f32 %v451_v50, %v988_v9  ;;  %v477_v17 = vmul.f32 %v447_v49, %v959_v2  ;;  %v478_v22 = vmul.f32 %v447_v49, %v966_v4 }
 0x2a5   :  { %v459_v44 = vpop.permute.xlu0 %458  ;;  %v463_v51 = vpop.permute.xlu1 %462 }
 0x2a6   :  { %v485_v43 = vmul.f32 %v463_v51, %v949_v0  ;;  %v486_v61 = vmul.f32 %v463_v51, %v954_v1  ;;  %v483_v19 = vmul.f32 %v459_v44, %v1013_v24  ;;  %v484_v20 = vmul.f32 %v459_v44, %v1018_v25 }
 0x2a9   :  { %v467_v52 = vpop.permute.xlu0 %466  ;;  %v455_v53 = vpop.permute.xlu1 %454 }
 0x2aa   :  { %v487_v10 = vmul.f32 %v467_v52, %v971_v5  ;;  %v488_v13 = vmul.f32 %v467_v52, %v976_v6  ;;  %v481_v51 = vmul.f32 %v455_v53, %v1023_v26 }
 0x2ad   :  { %v1186_v54 = vpop.permute.xlu0 %474  ;;  %v471_v56 = vpop.permute.xlu1 %470 }
 0x2ae   :  { %v489_v23 = vmul.f32 %v471_v56, %v1047_v32  ;;  %v490_v50 = vmul.f32 %v471_v56, %v1052_v33 }
 0x307   :  { %v501_v57 = vpop.permute.xlu0 %500 }
 0x308   :  { %v535_v58 = vadd.f32 %v501_v57, %v479_v40  ;;  %v536_v59 = vadd.f32 %v501_v57, %v480_v55  ;;  %v482_v57 = vmul.f32 %v455_v53, %v1028_v27 }
 0x30a   :  { %v755_v60 = vmul.f32 -1.442695, %v535_v58  ;;  %v756_v62 = vmul.f32 -1.442695, %v536_v59 }
 0x30b   :  { %v521_v63 = vpop.permute.xlu1 %520  ;;  %v516_v3 = vpop.permute.xlu0 %515 }
 0x30c   :  { %v541_v7 = vadd.f32 %v516_v3, %v485_v43  ;;  %853 = vpow2.f32 %v755_v60  ;;  %v542_v11 = vadd.f32 %v516_v3, %v486_v61  ;;  %v543_v14 = vadd.f32 %v521_v63, %v487_v10 }
 0x30d   :  { %855 = vpow2.f32 %v756_v62  ;;  %v544_v18 = vadd.f32 %v521_v63, %v488_v13  ;;  %v491_v61 = vmul.f32 %v1186_v54, %v1037_v30  ;;  %v492_v10 = vmul.f32 %v1186_v54, %v1042_v31 }
 0x30e   :  { %v761_v12 = vmul.f32 -1.442695, %v541_v7  ;;  %v762_v15 = vmul.f32 -1.442695, %v542_v11  ;;  %v763_v28 = vmul.f32 -1.442695, %v543_v14 }
 0x30f   :  { %v496_v16 = vpop.permute.xlu1 %495  ;;  %v764_v38 = vmul.f32 -1.442695, %v544_v18 }
 0x310   :  { %857 = vpow2.f32 %v761_v12  ;;  %v533_v21 = vadd.f32 %v496_v16, %v477_v17  ;;  %v534_v41 = vadd.f32 %v496_v16, %v478_v22 }
 0x311   :  { %859 = vpow2.f32 %v762_v15 }
 0x312   :  { %v753_v42 = vmul.f32 -1.442695, %v533_v21  ;;  %861 = vpow2.f32 %v763_v28  ;;  %v754_v44 = vmul.f32 -1.442695, %v534_v41 }
 0x313   :  { %v511_v29 = vpop.permute.xlu1 %510 }
 0x314   :  { %v539_v35 = vadd.f32 %v511_v29, %v483_v19  ;;  %v540_v36 = vadd.f32 %v511_v29, %v484_v20  ;;  %v526_v39 = vpop.permute.xlu0 %525 }
 0x315   :  { %v545_v34 = vadd.f32 %v526_v39, %v489_v23  ;;  %v546_v40 = vadd.f32 %v526_v39, %v490_v50 }
 0x316   :  { %v759_v45 = vmul.f32 -1.442695, %v539_v35  ;;  %v854_v46 = vpop.eup %853  ;;  %v760_v37 = vmul.f32 -1.442695, %v540_v36 }
 0x317   :  { %v506_v47 = vpop.permute.xlu1 %505  ;;  %v765_v48 = vmul.f32 -1.442695, %v545_v34  ;;  %v856_v49 = vpop.eup %855  ;;  %v599_v52 = vadd.f32 1.0, %v854_v46  ;;  %v766_v3 = vmul.f32 -1.442695, %v546_v40 }
 0x318   :  { %863 = vpow2.f32 %v759_v45  ;;  %v600_v58 = vadd.f32 1.0, %v856_v49  ;;  %v537_v59 = vadd.f32 %v506_v47, %v481_v51  ;;  %v538_v63 = vadd.f32 %v506_v47, %v482_v57 }
 0x319   :  { %865 = vpow2.f32 %v764_v38 }
 0x31a   :  { %867 = vpow2.f32 %v753_v42  ;;  %v858_v55 = vpop.eup %857  ;;  %v757_v53 = vmul.f32 -1.442695, %v537_v59  ;;  %v758_v13 = vmul.f32 -1.442695, %v538_v63 }
 0x31b   :  { %869 = vpow2.f32 %v760_v37  ;;  %v531_v43 = vpop.permute.xlu1 %530  ;;  %v860_v60 = vpop.eup %859  ;;  %v605_v56 = vadd.f32 1.0, %v858_v55 }
 0x31c   :  { %871 = vpow2.f32 %v765_v48  ;;  %v606_v62 = vadd.f32 1.0, %v860_v60  ;;  %v547_v7 = vadd.f32 %v531_v43, %v491_v61  ;;  %v862_v11 = vpop.eup %861  ;;  %v548_v14 = vadd.f32 %v531_v43, %v492_v10 }
 0x31d   :  { %873 = vpow2.f32 %v754_v44  ;;  %v607_v23 = vadd.f32 1.0, %v862_v11 }
 0x31e   :  { %875 = vrcp.f32 %v599_v52  ;;  %v767_v17 = vmul.f32 -1.442695, %v547_v7  ;;  %v768_v54 = vmul.f32 -1.442695, %v548_v14 }
 0x31f   :  { %877 = vrcp.f32 %v600_v58 }
 0x320   :  { %879 = vrcp.f32 %v605_v56 }
 0x321   :  { %881 = vrcp.f32 %v606_v62 }
 0x322   :  { %v864_v12 = vpop.eup %863  ;;  %883 = vpow2.f32 %v766_v3 }
 0x323   :  { %v866_v15 = vpop.eup %865  ;;  %v603_v16 = vadd.f32 1.0, %v864_v12  ;;  %885 = vpow2.f32 %v757_v53 }
 0x324   :  { %v868_v18 = vpop.eup %867  ;;  %v608_v36 = vadd.f32 1.0, %v866_v15 }
 0x325   :  { %v870_v19 = vpop.eup %869  ;;  %887 = vrcp.f32 %v603_v16  ;;  %v597_v35 = vadd.f32 1.0, %v868_v18 }
 0x326   :  { %v872_v20 = vpop.eup %871  ;;  %v604_v21 = vadd.f32 1.0, %v870_v19  ;;  %889 = vpow2.f32 %v758_v13 }
 0x327   :  { %v874_v22 = vpop.eup %873  ;;  %v609_v28 = vadd.f32 1.0, %v872_v20  ;;  %891 = vpow2.f32 %v767_v17 }
 0x328   :  { %v876_v29 = vpop.eup %875  ;;  %893 = vrcp.f32 %v604_v21  ;;  %v598_v38 = vadd.f32 1.0, %v874_v22 }
 0x329   :  { %895 = vrcp.f32 %v609_v28  ;;  %v878_v39 = vpop.eup %877  ;;  %v647_v34 = vmul.f32 %v876_v29, %v983_v8  ;;  %vm663_vm2 = vcmp.gt.f32.partialorder %v876_v29, 0.5 }
 0x32a   :  { %897 = vpow2.f32 %v768_v54  ;;  %v880_v41 = vpop.eup %879  ;;  %v648_v46 = vmul.f32 %v878_v39, %v988_v9  ;;  %vm664_vm3 = vcmp.gt.f32.partialorder %v878_v39, 0.5 }
 0x32b   :  { %899 = vrcp.f32 %v607_v23  ;;  %v1207_v42 = vpop.eup %881  ;;  %v653_v47 = vmul.f32 %v880_v41, %v949_v0  ;;  %v671_v50 = vsel %vm663_vm2, %v983_v8, %v647_v34  ;;  %vm665_vm4 = vcmp.gt.f32.partialorder %v880_v41, 0.5 }
 0x32c   :  { %901 = vrcp.f32 %v597_v35  ;;  %v884_v45 = vpop.eup %883  ;;  %v719_v52 = vsel %vm663_vm2, 0.0, %v647_v34  ;;  %v672_v57 = vsel %vm664_vm3, %v988_v9, %v648_v46  ;;  %v720_v58 = vsel %vm664_vm3, 0.0, %v648_v46 }
 0x32d   :  { %903 = vrcp.f32 %v608_v36  ;;  %v886_v37 = vpop.eup %885  ;;  %v610_v48 = vadd.f32 1.0, %v884_v45  ;;  %v721_v60 = vsel %vm665_vm4, 0.0, %v653_v47  ;;  %v673_v9 = vsel %vm665_vm4, %v949_v0, %v653_v47 }
 0x32e   :  { %905 = vrcp.f32 %v598_v38  ;;  %v601_v44 = vadd.f32 1.0, %v886_v37  ;;  %v654_v19 = vmul.f32 %v1207_v42, %v954_v1  ;;  %vm666_vm8 = vcmp.gt.f32.partialorder %v1207_v42, 0.5 }
 0x32f   :  { %v888_v49 = vpop.eup %887  ;;  %907 = vrcp.f32 %v610_v48 }
 0x330   :  { %v890_v51 = vpop.eup %889  ;;  %v651_v40 = vmul.f32 %v888_v49, %v1013_v24  ;;  %vm679_vm5 = vcmp.gt.f32.partialorder %v888_v49, 0.5  ;;  %909 = vrcp.f32 %v601_v44  ;;  %v722_v29 = vsel %vm666_vm8, 0.0, %v654_v19 }
 0x331   :  { %v892_v55 = vpop.eup %891  ;;  %v602_v59 = vadd.f32 1.0, %v890_v51  ;;  %v674_v39 = vsel %vm666_vm8, %v954_v1, %v654_v19 }
 0x332   :  { %v894_v43 = vpop.eup %893  ;;  %v687_v61 = vsel %vm679_vm5, 0.0, %v651_v40  ;;  %v711_v8 = vsel %vm679_vm5, %v1013_v24, %v651_v40  ;;  %v611_v56 = vadd.f32 1.0, %v892_v55 }
 0x333   :  { %v896_v62 = vpop.eup %895  ;;  %v652_v63 = vmul.f32 %v894_v43, %v1018_v25  ;;  %vm680_vm6 = vcmp.gt.f32.partialorder %v894_v43, 0.5  ;;  %v695_v3 = vadd.f32 %v687_v61, %v671_v50  ;;  %v727_v7 = vadd.f32 %v719_v52, %v711_v8 }
 0x334   :  { %v898_v10 = vpop.eup %897  ;;  %v657_v53 = vmul.f32 %v896_v62, %v1047_v32  ;;  %vm681_vm7 = vcmp.gt.f32.partialorder %v896_v62, 0.5  ;;  %911 = vrcp.f32 %v602_v59 }
 0x335   :  { %v1220_v11 = vpop.eup %899  ;;  %v688_v12 = vsel %vm680_vm6, 0.0, %v652_v63  ;;  %703 = vst [vmem:[%s1312_s4 + $0x10] sm:$0xff] %v695_v3  ;;  %v712_v24 = vsel %vm680_vm6, %v1018_v25, %v652_v63  ;;  %735 = vst [vmem:[%s1312_s4 + $0x30] sm:$0xff] %v727_v7  ;;  %v612_v13 = vadd.f32 1.0, %v898_v10  ;;  %913 = vrcp.f32 %v611_v56 }
 0x336   :  { %v902_v0 = vpop.eup %901  ;;  %v696_v14 = vadd.f32 %v688_v12, %v672_v57  ;;  %v728_v15 = vadd.f32 %v720_v58, %v712_v24  ;;  %v689_v16 = vsel %vm681_vm7, 0.0, %v657_v53  ;;  %v713_v17 = vsel %vm681_vm7, %v1047_v32, %v657_v53 }
 0x337   :  { %v904_v18 = vpop.eup %903  ;;  %v697_v20 = vadd.f32 %v689_v16, %v673_v9  ;;  %v729_v21 = vadd.f32 %v721_v60, %v713_v17  ;;  %915 = vrcp.f32 %v612_v13  ;;  %v655_v32 = vmul.f32 %v1220_v11, %v971_v5 }
 0x338   :  { %v906_v25 = vpop.eup %905  ;;  %704 = vst [vmem:[%s1312_s4 + $0x18] sm:$0xff] %v696_v14  ;;  %736 = vst [vmem:[%s1312_s4 + $0x38] sm:$0xff] %v728_v15  ;;  %v645_v54 = vmul.f32 %v902_v0, %v959_v2  ;;  %v656_v23 = vmul.f32 %v904_v18, %v976_v6  ;;  %vm667_vm9 = vcmp.gt.f32.partialorder %v1220_v11, 0.5  ;;  %vm668_vm10 = vcmp.gt.f32.partialorder %v904_v18, 0.5 }
 0x339   :  { %705 = vst [vmem:[%s1312_s4 + $0x40] sm:$0xff] %v697_v20  ;;  %737 = vst [vmem:[%s1312_s4 + $0x60] sm:$0xff] %v729_v21  ;;  %v908_v22 = vpop.eup %907  ;;  %vm661_vm11 = vcmp.gt.f32.partialorder %v902_v0, 0.5  ;;  %v646_v35 = vmul.f32 %v906_v25, %v966_v4  ;;  %vm662_vm13 = vcmp.gt.f32.partialorder %v906_v25, 0.5  ;;  %v723_v52 = vsel %vm667_vm9, 0.0, %v655_v32 }
 0x33a   :  { %v910_v28 = vpop.eup %909  ;;  %v658_v36 = vmul.f32 %v908_v22, %v1052_v33  ;;  %vm682_vm12 = vcmp.gt.f32.partialorder %v908_v22, 0.5  ;;  %v669_v41 = vsel %vm661_vm11, %v959_v2, %v645_v54  ;;  %v717_v34 = vsel %vm661_vm11, 0.0, %v645_v54 }
 0x33b   :  { %v649_v38 = vmul.f32 %v910_v28, %v1023_v26  ;;  %vm677_vm14 = vcmp.gt.f32.partialorder %v910_v28, 0.5  ;;  %v724_v2 = vsel %vm668_vm10, 0.0, %v656_v23  ;;  %v670_v40 = vsel %vm662_vm13, %v966_v4, %v646_v35 }
 0x33c   :  { %v690_v45 = vsel %vm682_vm12, 0.0, %v658_v36  ;;  %v714_v46 = vsel %vm682_vm12, %v1052_v33, %v658_v36  ;;  %v718_v55 = vsel %vm662_vm13, 0.0, %v646_v35  ;;  %v675_v4 = vsel %vm667_vm9, %v971_v5, %v655_v32 }
 0x33d   :  { %v698_v47 = vadd.f32 %v690_v45, %v674_v39  ;;  %v730_v48 = vadd.f32 %v722_v29, %v714_v46  ;;  %v685_v49 = vsel %vm677_vm14, 0.0, %v649_v38  ;;  %v709_v50 = vsel %vm677_vm14, %v1023_v26, %v649_v38 }
 0x33e   :  { %v912_v37 = vpop.eup %911  ;;  %v693_v1 = vadd.f32 %v685_v49, %v669_v41  ;;  %v725_v42 = vadd.f32 %v717_v34, %v709_v50  ;;  %v676_v61 = vsel %vm668_vm10, %v976_v6, %v656_v23 }
 0x33f   :  { %v914_v44 = vpop.eup %913  ;;  %v650_v51 = vmul.f32 %v912_v37, %v1028_v27  ;;  %vm678_vm15 = vcmp.gt.f32.partialorder %v912_v37, 0.5  ;;  %706 = vst [vmem:[%s1312_s4 + $0x48] sm:$0xff] %v698_v47  ;;  %738 = vst [vmem:[%s1312_s4 + $0x68] sm:$0xff] %v730_v48 }
 0x340   :  { %v659_v26 = vmul.f32 %v914_v44, %v1037_v30  ;;  %vm683_vm0 = vcmp.gt.f32.partialorder %v914_v44, 0.5  ;;  %701 = vst [vmem:[%s1312_s4] sm:$0xff] %v693_v1  ;;  %733 = vst [vmem:[%s1312_s4 + $0x20] sm:$0xff] %v725_v42 }
 0x341   :  { %v916_v33 = vpop.eup %915  ;;  %v686_v57 = vsel %vm678_vm15, 0.0, %v650_v51  ;;  %v710_v58 = vsel %vm678_vm15, %v1028_v27, %v650_v51 }
 0x342   :  { %v694_v59 = vadd.f32 %v686_v57, %v670_v40  ;;  %v726_v43 = vadd.f32 %v718_v55, %v710_v58  ;;  %v660_v60 = vmul.f32 %v916_v33, %v1042_v31  ;;  %vm684_vm1 = vcmp.gt.f32.partialorder %v916_v33, 0.5 }
 0x343   :  { %v691_v8 = vsel %vm683_vm0, 0.0, %v659_v26  ;;  %v715_v56 = vsel %vm683_vm0, %v1037_v30, %v659_v26 }
 0x344   :  { %702 = vst [vmem:[%s1312_s4 + $0x8] sm:$0xff] %v694_v59  ;;  %734 = vst [vmem:[%s1312_s4 + $0x28] sm:$0xff] %v726_v43  ;;  %v692_v27 = vsel %vm684_vm1, 0.0, %v660_v60  ;;  %v699_v62 = vadd.f32 %v691_v8, %v675_v4  ;;  %v716_v63 = vsel %vm684_vm1, %v1042_v31, %v660_v60  ;;  %v731_v3 = vadd.f32 %v723_v52, %v715_v56 }
 0x345   :  { %v700_v5 = vadd.f32 %v692_v27, %v676_v61  ;;  %v732_v7 = vadd.f32 %v724_v2, %v716_v63 }
 0x346   :  { %707 = vst [vmem:[%s1312_s4 + $0x50] sm:$0xff] %v699_v62  ;;  %739 = vst [vmem:[%s1312_s4 + $0x70] sm:$0xff] %v731_v3 }
 0x347   :  { %708 = vst [vmem:[%s1312_s4 + $0x58] sm:$0xff] %v700_v5  ;;  %740 = vst [vmem:[%s1312_s4 + $0x78] sm:$0xff] %v732_v7 }

</bundles_post_ra>
